<compile_context>
chip_gen: v6e
topology: v6e:2x2x1
jax: 0.10.0
libtpu: 0.0.40
codegen_flags: <defaults>
</compile_context>

<pallas_src>
import functools

import jax
import jax.numpy as jnp
import numpy as np
from jax.experimental import pallas as pl
from jax.experimental.pallas import tpu as pltpu


def _distogram_kernel(ib_ref, jb_ref,               # scalar-prefetch (SMEM)
                      z_ij_ref, z_ji_ref, w_ref,    # auto-pipelined inputs (VMEM)
                      out_ref,                      # raw HBM output (pl.ANY)
                      up_buf, lo_buf, sem,          # scratch (2-slot staging + sems)
                      *, tile, nbins):
    b = pl.program_id(0)
    k = pl.program_id(1)
    nk = pl.num_programs(1)
    t = tile
    tn = t * nbins
    slot = k % 2

    def up_copy(s, kk):
        row = pl.multiple_of(ib_ref[kk] * t, t)
        col = pl.multiple_of(jb_ref[kk] * tn, tn)
        return pltpu.make_async_copy(
            up_buf.at[s],
            out_ref.at[b, pl.ds(row, t), pl.ds(col, tn)],
            sem.at[s, 0])

    def lo_copy(s, kk):
        row = pl.multiple_of(jb_ref[kk] * t, t)
        col = pl.multiple_of(ib_ref[kk] * tn, tn)
        return pltpu.make_async_copy(
            lo_buf.at[s],
            out_ref.at[b, pl.ds(row, t), pl.ds(col, tn)],
            sem.at[s, 1])

    def wait_pair(s, kk):
        up_copy(s, kk).wait()

        @pl.when(ib_ref[kk] != jb_ref[kk])
        def _():
            lo_copy(s, kk).wait()

    ib = ib_ref[k]
    jb = jb_ref[k]

    z_a = z_ij_ref[...]                    # (t, t, C)  = z[b, I, J, :]
    z_b = z_ji_ref[...]                    # (t, t, C)  = z[b, J, I, :]
    w = w_ref[...]                         # (C, nbins)
    c = z_a.shape[-1]

    # Project each tile, then transpose the narrow (nbins-wide) results instead
    # of the C-wide inputs.  f32 accumulation on the MXU.
    y_a = jnp.dot(z_a.reshape(t * t, c), w,
                  preferred_element_type=jnp.float32).reshape(t, t, nbins)
    y_b = jnp.dot(z_b.reshape(t * t, c), w,
                  preferred_element_type=jnp.float32).reshape(t, t, nbins)

    up = y_a + jnp.transpose(y_b, (1, 0, 2))   # out[b, I, J, :]
    lo = jnp.transpose(up, (1, 0, 2))          # out[b, J, I, :]  (== up mirrored)

    # Lane-dense (t, t*nbins) staging buffers for the output DMAs.
    up_buf[slot] = up.reshape(t, tn).astype(up_buf.dtype)
    lo_buf[slot] = lo.reshape(t, tn).astype(lo_buf.dtype)

    up_copy(slot, k).start()

    @pl.when(ib != jb)
    def _():
        lo_copy(slot, k).start()

    # Deferred drain: wait for the PREVIOUS step's writes at the end of this
    # step so they overlap this step's input prefetch and compute.  Slot reuse
    # is safe: slot s (written at step k) is next overwritten at step k+2, and
    # its DMAs are drained here during step k+1 (a separate grid iteration).
    @pl.when(k >= 1)
    def _():
        wait_pair(1 - slot, k - 1)

    # End of this batch row: nothing may outlive the row, so also drain the
    # DMAs issued by this (final) step.
    @pl.when(k == nk - 1)
    def _():
        wait_pair(slot, k)


def _pick_tile(n, c, nbins, dtype):
    """Largest tile (dividing n) whose double-buffered footprint fits a VMEM budget."""
    isz = jnp.dtype(dtype).itemsize
    budget = 48 * 1024 * 1024          # headroom under v7x's 64 MiB per-core VMEM
    divisors = [t for t in (256, 128, 64, 32, 16, 8) if n % t == 0]
    if not divisors:
        return n                        # single block over the full pair dims

    def vmem_bytes(t):
        return (2 * 2 * t * t * c * isz          # two input specs, double-buffered
                + 2 * 2 * t * t * nbins * isz    # up/lo staging, 2 slots each
                + c * nbins * 4)                 # resident weight (f32 upper bound)

    for t in divisors:
        if vmem_bytes(t) <= budget:
            return t
    return divisors[-1]


def distogram_head(z_ij, weight, *, tile=None):
    """Forward pass of DistogramHead.

    z_ij:   (B, N, N, C)  pair representation (channels-last layout).
    weight: (nbins, C)    nn.Linear(c_z, nbins, bias=False).weight, PyTorch layout.
    Returns (B, N, N, nbins).
    """
    B, N, N2, C = z_ij.shape
    assert N == N2, "pair representation must be square over (i, j)"
    nbins, c_w = weight.shape
    assert c_w == C, "weight must be (nbins, c_z)"

    if tile is None:
        tile = _pick_tile(N, C, nbins, z_ij.dtype)
    assert N % tile == 0, "N must be divisible by the tile size"

    nb = N // tile
    iu, ju = np.triu_indices(nb)                 # upper-triangle block pairs
    ib_arr = jnp.asarray(iu, dtype=jnp.int32)
    jb_arr = jnp.asarray(ju, dtype=jnp.int32)
    num_pairs = int(ib_arr.shape[0])

    w_t = weight.T                               # (C, nbins) so that x @ W

    itemsize = jnp.dtype(z_ij.dtype).itemsize
    cost = pl.CostEstimate(
        flops=2 * B * N * N * C * nbins + 2 * B * N * N * nbins,
        transcendentals=0,
        bytes_accessed=(B * N * N * C + B * N * N * nbins) * itemsize
                       + C * nbins * jnp.dtype(weight.dtype).itemsize,
    )

    kernel = functools.partial(_distogram_kernel, tile=tile, nbins=nbins)

    out_flat = pl.pallas_call(
        kernel,
        out_shape=jax.ShapeDtypeStruct((B, N, N * nbins), z_ij.dtype),
        grid_spec=pltpu.PrefetchScalarGridSpec(
            num_scalar_prefetch=2,
            grid=(B, num_pairs),
            in_specs=[
                # z[b, I, J, :]
                pl.BlockSpec((None, tile, tile, C),
                             lambda b, k, ib, jb: (b, ib[k], jb[k], 0)),
                # z[b, J, I, :]  (same array, mirrored tiling)
                pl.BlockSpec((None, tile, tile, C),
                             lambda b, k, ib, jb: (b, jb[k], ib[k], 0)),
                # weight stays resident across the whole grid
                pl.BlockSpec((C, nbins), lambda b, k, ib, jb: (0, 0)),
            ],
            out_specs=pl.BlockSpec(memory_space=pl.ANY),
            scratch_shapes=[
                pltpu.VMEM((2, tile, tile * nbins), z_ij.dtype),   # upper tiles
                pltpu.VMEM((2, tile, tile * nbins), z_ij.dtype),   # mirrored tiles
                pltpu.SemaphoreType.DMA((2, 2)),
            ],
        ),
        compiler_params=pltpu.CompilerParams(
            dimension_semantics=("parallel", "arbitrary"),
            vmem_limit_bytes=64 * 1024 * 1024,
        ),
        cost_estimate=cost,
    )(ib_arr, jb_arr, z_ij, z_ij, w_t)

    return out_flat.reshape(B, N, N, nbins)


if __name__ == "__main__":
    # Small, forward-consistent shapes: batch=2, seq=32, c_z=32, num_bins=64.
    B, N, C, NBINS = 2, 32, 32, 64

    key = jax.random.PRNGKey(0)
    kz, kw = jax.random.split(key)
    z_ij = jax.random.normal(kz, (B, N, N, C), dtype=jnp.float32)
    # nn.Linear(c_z, 64, bias=False).weight has PyTorch shape (64, c_z).
    bound = 1.0 / jnp.sqrt(jnp.float32(C))
    weight = jax.random.uniform(kw, (NBINS, C), dtype=jnp.float32,
                                minval=-bound, maxval=bound)

    # Pure-JAX reference of the PyTorch forward.
    ref = jnp.einsum("bijd,od->bijo",
                     z_ij + jnp.transpose(z_ij, (0, 2, 1, 3)), weight)

    # Multi-tile path: exercises diagonal blocks, mirrored off-diagonal writes,
    # and the deferred-wait double-buffering (10 block pairs per batch row).
    out = distogram_head(z_ij, weight, tile=8)
    out = jax.block_until_ready(out)
    assert out.shape == (B, N, N, NBINS)
    assert jnp.allclose(out, ref, atol=2e-5, rtol=2e-5)

    # Default (auto-picked) tiling path: single block per batch row.
    out2 = jax.block_until_ready(distogram_head(z_ij, weight))
    assert jnp.allclose(out2, ref, atol=2e-5, rtol=2e-5)

    # TODO(synk): CBDistogramEmbedding / get_loss_terms are loss-time utilities,
    # not part of forward(), and are intentionally not implemented as a kernel.
    print("KERNEL_OK")
</pallas_src>

<mosaic_0001>
module attributes {stable_mosaic.version = 11 : i64} {
  func.func @_distogram_kernel(%arg0: i32, %arg1: i32, %arg2: memref<10xi32, #tpu.memory_space<smem>>, %arg3: memref<10xi32, #tpu.memory_space<smem>>, %arg4: memref<1x8x8x32xf32, #tpu.memory_space<vmem>>, %arg5: memref<1x8x8x32xf32, #tpu.memory_space<vmem>>, %arg6: memref<32x64xf32, #tpu.memory_space<vmem>>, %arg7: memref<2x32x2048xf32, #tpu.memory_space<any>>, %arg8: memref<2x8x512xf32, #tpu.memory_space<vmem>>, %arg9: memref<2x8x512xf32, #tpu.memory_space<vmem>>, %arg10: memref<2x2x!tpu.dma_semaphore, #tpu.memory_space<semaphore_mem>>) attributes {dimension_semantics = [#tpu.dimension_semantics<parallel>, #tpu.dimension_semantics<arbitrary>], iteration_bounds = array<i64: 2, 10>, scalar_prefetch = 2 : i64, scratch_operands = 3 : i64, tpu.core_type = #tpu.core_type<tc>, window_params = [{transform_indices = @transform_0, window_bounds = array<i64: 1, 8, 8, 32>}, {transform_indices = @transform_1, window_bounds = array<i64: 1, 8, 8, 32>}, {pipeline_mode = #tpu.pipeline_mode<synchronous>, transform_indices = @transform_2, window_bounds = array<i64: 32, 64>}, {}]} {
    %c2_i32 = arith.constant 2 : i32
    %c0_i32 = arith.constant 0 : i32
    %0 = arith.cmpi eq, %c2_i32, %c0_i32 : i32
    %c1_i32 = arith.constant 1 : i32
    %1 = arith.select %0, %c1_i32, %c2_i32 : i32
    %2 = arith.remsi %arg1, %1 : i32
    %c0_i32_0 = arith.constant 0 : i32
    %3 = arith.cmpi ne, %2, %c0_i32_0 : i32
    %c0_i32_1 = arith.constant 0 : i32
    %4 = arith.cmpi slt, %2, %c0_i32_1 : i32
    %c0_i32_2 = arith.constant 0 : i32
    %5 = arith.cmpi slt, %1, %c0_i32_2 : i32
    %6 = arith.xori %4, %5 : i1
    %7 = arith.andi %6, %3 : i1
    %8 = arith.addi %2, %1 : i32
    %9 = arith.select %7, %8, %2 : i32
    %10 = arith.index_cast %arg1 : i32 to index
    %11 = memref.load %arg2[%10] : memref<10xi32, #tpu.memory_space<smem>>
    %12 = arith.index_cast %arg1 : i32 to index
    %13 = memref.load %arg3[%12] : memref<10xi32, #tpu.memory_space<smem>>
    %c0 = arith.constant 0 : index
    %c0_3 = arith.constant 0 : index
    %c0_4 = arith.constant 0 : index
    %c0_5 = arith.constant 0 : index
    %14 = vector.load %arg4[%c0, %c0_3, %c0_4, %c0_5] : memref<1x8x8x32xf32, #tpu.memory_space<vmem>>, vector<1x8x8x32xf32>
    %15 = vector.shape_cast %14 : vector<1x8x8x32xf32> to vector<8x8x32xf32>
    %c0_6 = arith.constant 0 : index
    %c0_7 = arith.constant 0 : index
    %c0_8 = arith.constant 0 : index
    %c0_9 = arith.constant 0 : index
    %16 = vector.load %arg5[%c0_6, %c0_7, %c0_8, %c0_9] : memref<1x8x8x32xf32, #tpu.memory_space<vmem>>, vector<1x8x8x32xf32>
    %17 = vector.shape_cast %16 : vector<1x8x8x32xf32> to vector<8x8x32xf32>
    %c0_10 = arith.constant 0 : index
    %c0_11 = arith.constant 0 : index
    %18 = vector.load %arg6[%c0_10, %c0_11] : memref<32x64xf32, #tpu.memory_space<vmem>>, vector<32x64xf32>
    %19 = vector.shape_cast %15 : vector<8x8x32xf32> to vector<64x32xf32>
    %cst = arith.constant dense<0.000000e+00> : vector<64x64xf32>
    %20 = tpu.matmul %19, %18, %cst {dimension_numbers = #tpu.dot_dimension_numbers<[1], [0], [0], [1], [0, 0, 1, 1], [], []>} : vector<64x32xf32>, vector<32x64xf32>, vector<64x64xf32> -> vector<64x64xf32>
    %21 = vector.shape_cast %20 : vector<64x64xf32> to vector<8x8x64xf32>
    %22 = vector.shape_cast %17 : vector<8x8x32xf32> to vector<64x32xf32>
    %cst_12 = arith.constant dense<0.000000e+00> : vector<64x64xf32>
    %23 = tpu.matmul %22, %18, %cst_12 {dimension_numbers = #tpu.dot_dimension_numbers<[1], [0], [0], [1], [0, 0, 1, 1], [], []>} : vector<64x32xf32>, vector<32x64xf32>, vector<64x64xf32> -> vector<64x64xf32>
    %24 = vector.shape_cast %23 : vector<64x64xf32> to vector<8x8x64xf32>
    %25 = tpu.transpose %24, [1, 0, 2] : vector<8x8x64xf32> -> vector<8x8x64xf32>
    %26 = arith.addf %21, %25 : vector<8x8x64xf32>
    %27 = tpu.transpose %26, [1, 0, 2] : vector<8x8x64xf32> -> vector<8x8x64xf32>
    %28 = vector.shape_cast %26 : vector<8x8x64xf32> to vector<8x512xf32>
    %29 = arith.index_cast %9 : i32 to index
    %c0_13 = arith.constant 0 : index
    %c0_14 = arith.constant 0 : index
    %30 = vector.load %arg8[%29, %c0_13, %c0_14] : memref<2x8x512xf32, #tpu.memory_space<vmem>>, vector<1x8x512xf32>
    %31 = vector.shape_cast %30 : vector<1x8x512xf32> to vector<8x512xf32>
    %32 = vector.shape_cast %28 : vector<8x512xf32> to vector<1x8x512xf32>
    tpu.vector_store %arg8[%29, %c0_13, %c0_14], %32 {strides = array<i32>} : memref<2x8x512xf32, #tpu.memory_space<vmem>>, vector<1x8x512xf32>,
    %33 = vector.shape_cast %27 : vector<8x8x64xf32> to vector<8x512xf32>
    %34 = arith.index_cast %9 : i32 to index
    %c0_15 = arith.constant 0 : index
    %c0_16 = arith.constant 0 : index
    %35 = vector.load %arg9[%34, %c0_15, %c0_16] : memref<2x8x512xf32, #tpu.memory_space<vmem>>, vector<1x8x512xf32>
    %36 = vector.shape_cast %35 : vector<1x8x512xf32> to vector<8x512xf32>
    %37 = vector.shape_cast %33 : vector<8x512xf32> to vector<1x8x512xf32>
    tpu.vector_store %arg9[%34, %c0_15, %c0_16], %37 {strides = array<i32>} : memref<2x8x512xf32, #tpu.memory_space<vmem>>, vector<1x8x512xf32>,
    %38 = arith.index_cast %arg1 : i32 to index
    %39 = memref.load %arg2[%38] : memref<10xi32, #tpu.memory_space<smem>>
    %c8_i32 = arith.constant 8 : i32
    %40 = arith.muli %39, %c8_i32 : i32
    %41 = tpu.assume_multiple %40, 8 : i32
    %42 = arith.index_cast %arg1 : i32 to index
    %43 = memref.load %arg3[%42] : memref<10xi32, #tpu.memory_space<smem>>
    %c512_i32 = arith.constant 512 : i32
    %44 = arith.muli %43, %c512_i32 : i32
    %45 = tpu.assume_multiple %44, 512 : i32
    %c0_i32_17 = arith.constant 0 : i32
    %c0_i32_18 = arith.constant 0 : i32
    %c0_i32_19 = arith.constant 0 : i32
    %46 = tpu.memref_slice %arg8[%9, %c0_i32_18, %c0_i32_19] : memref<2x8x512xf32, #tpu.memory_space<vmem>> -> memref<1x8x512xf32, #tpu.memory_space<vmem>>
    %47 = tpu.memref_squeeze %46 : memref<1x8x512xf32, #tpu.memory_space<vmem>> -> memref<8x512xf32, #tpu.memory_space<vmem>>
    %48 = tpu.memref_slice %arg7[%arg0, %41, %45] : memref<2x32x2048xf32, #tpu.memory_space<any>> -> memref<1x8x512xf32, #tpu.memory_space<any>>
    %49 = tpu.memref_squeeze %48 : memref<1x8x512xf32, #tpu.memory_space<any>> -> memref<8x512xf32, #tpu.memory_space<any>>
    %50 = tpu.memref_slice %arg10[%9, %c0_i32_17] : memref<2x2x!tpu.dma_semaphore, #tpu.memory_space<semaphore_mem>> -> memref<1x1x!tpu.dma_semaphore, #tpu.memory_space<semaphore_mem>>
    %51 = tpu.memref_squeeze %50 : memref<1x1x!tpu.dma_semaphore, #tpu.memory_space<semaphore_mem>> -> memref<!tpu.dma_semaphore, #tpu.memory_space<semaphore_mem>>
    tpu.enqueue_dma source(%47 : memref<8x512xf32, #tpu.memory_space<vmem>>) target(%49 : memref<8x512xf32, #tpu.memory_space<any>>) target_semaphore(%51 : memref<!tpu.dma_semaphore, #tpu.memory_space<semaphore_mem>>)
    %52 = arith.cmpi ne, %11, %13 : i32
    %53 = arith.extui %52 : i1 to i32
    %c0_i32_20 = arith.constant 0 : i32
    %54 = arith.cmpi ne, %53, %c0_i32_20 : i32
    scf.if %54 {
      %61 = arith.index_cast %arg1 : i32 to index
      %62 = memref.load %arg3[%61] : memref<10xi32, #tpu.memory_space<smem>>
      %c8_i32_24 = arith.constant 8 : i32
      %63 = arith.muli %62, %c8_i32_24 : i32
      %64 = tpu.assume_multiple %63, 8 : i32
      %65 = arith.index_cast %arg1 : i32 to index
      %66 = memref.load %arg2[%65] : memref<10xi32, #tpu.memory_space<smem>>
      %c512_i32_25 = arith.constant 512 : i32
      %67 = arith.muli %66, %c512_i32_25 : i32
      %68 = tpu.assume_multiple %67, 512 : i32
      %c1_i32_26 = arith.constant 1 : i32
      %c0_i32_27 = arith.constant 0 : i32
      %c0_i32_28 = arith.constant 0 : i32
      %69 = tpu.memref_slice %arg9[%9, %c0_i32_27, %c0_i32_28] : memref<2x8x512xf32, #tpu.memory_space<vmem>> -> memref<1x8x512xf32, #tpu.memory_space<vmem>>
      %70 = tpu.memref_squeeze %69 : memref<1x8x512xf32, #tpu.memory_space<vmem>> -> memref<8x512xf32, #tpu.memory_space<vmem>>
      %71 = tpu.memref_slice %arg7[%arg0, %64, %68] : memref<2x32x2048xf32, #tpu.memory_space<any>> -> memref<1x8x512xf32, #tpu.memory_space<any>>
      %72 = tpu.memref_squeeze %71 : memref<1x8x512xf32, #tpu.memory_space<any>> -> memref<8x512xf32, #tpu.memory_space<any>>
      %73 = tpu.memref_slice %arg10[%9, %c1_i32_26] : memref<2x2x!tpu.dma_semaphore, #tpu.memory_space<semaphore_mem>> -> memref<1x1x!tpu.dma_semaphore, #tpu.memory_space<semaphore_mem>>
      %74 = tpu.memref_squeeze %73 : memref<1x1x!tpu.dma_semaphore, #tpu.memory_space<semaphore_mem>> -> memref<!tpu.dma_semaphore, #tpu.memory_space<semaphore_mem>>
      tpu.enqueue_dma source(%70 : memref<8x512xf32, #tpu.memory_space<vmem>>) target(%72 : memref<8x512xf32, #tpu.memory_space<any>>) target_semaphore(%74 : memref<!tpu.dma_semaphore, #tpu.memory_space<semaphore_mem>>)
    } else {
    }
    %c1_i32_21 = arith.constant 1 : i32
    %55 = arith.cmpi sge, %arg1, %c1_i32_21 : i32
    %56 = arith.extui %55 : i1 to i32
    %c0_i32_22 = arith.constant 0 : i32
    %57 = arith.cmpi ne, %56, %c0_i32_22 : i32
    scf.if %57 {
      %c1_i32_24 = arith.constant 1 : i32
      %61 = arith.subi %c1_i32_24, %9 : i32
      %c1_i32_25 = arith.constant 1 : i32
      %62 = arith.subi %arg1, %c1_i32_25 : i32
      %63 = arith.index_cast %62 : i32 to index
      %64 = memref.load %arg2[%63] : memref<10xi32, #tpu.memory_space<smem>>
      %c8_i32_26 = arith.constant 8 : i32
      %65 = arith.muli %64, %c8_i32_26 : i32
      %66 = tpu.assume_multiple %65, 8 : i32
      %67 = arith.index_cast %62 : i32 to index
      %68 = memref.load %arg3[%67] : memref<10xi32, #tpu.memory_space<smem>>
      %c512_i32_27 = arith.constant 512 : i32
      %69 = arith.muli %68, %c512_i32_27 : i32
      %70 = tpu.assume_multiple %69, 512 : i32
      %c0_i32_28 = arith.constant 0 : i32
      %c0_i32_29 = arith.constant 0 : i32
      %c0_i32_30 = arith.constant 0 : i32
      %71 = tpu.memref_slice %arg8[%61, %c0_i32_29, %c0_i32_30] : memref<2x8x512xf32, #tpu.memory_space<vmem>> -> memref<1x8x512xf32, #tpu.memory_space<vmem>>
      %72 = tpu.memref_squeeze %71 : memref<1x8x512xf32, #tpu.memory_space<vmem>> -> memref<8x512xf32, #tpu.memory_space<vmem>>
      %73 = tpu.memref_slice %arg7[%arg0, %66, %70] : memref<2x32x2048xf32, #tpu.memory_space<any>> -> memref<1x8x512xf32, #tpu.memory_space<any>>
      %74 = tpu.memref_squeeze %73 : memref<1x8x512xf32, #tpu.memory_space<any>> -> memref<8x512xf32, #tpu.memory_space<any>>
      %75 = tpu.memref_slice %arg10[%61, %c0_i32_28] : memref<2x2x!tpu.dma_semaphore, #tpu.memory_space<semaphore_mem>> -> memref<1x1x!tpu.dma_semaphore, #tpu.memory_space<semaphore_mem>>
      %76 = tpu.memref_squeeze %75 : memref<1x1x!tpu.dma_semaphore, #tpu.memory_space<semaphore_mem>> -> memref<!tpu.dma_semaphore, #tpu.memory_space<semaphore_mem>>
      tpu.wait_dma2 semaphore(%76 : memref<!tpu.dma_semaphore, #tpu.memory_space<semaphore_mem>>) src(%72 : memref<8x512xf32, #tpu.memory_space<vmem>>) dst(%74 : memref<8x512xf32, #tpu.memory_space<any>>)
      %77 = arith.index_cast %62 : i32 to index
      %78 = memref.load %arg2[%77] : memref<10xi32, #tpu.memory_space<smem>>
      %79 = arith.index_cast %62 : i32 to index
      %80 = memref.load %arg3[%79] : memref<10xi32, #tpu.memory_space<smem>>
      %81 = arith.cmpi ne, %78, %80 : i32
      %82 = arith.extui %81 : i1 to i32
      %c0_i32_31 = arith.constant 0 : i32
      %83 = arith.cmpi ne, %82, %c0_i32_31 : i32
      scf.if %83 {
        %84 = arith.index_cast %62 : i32 to index
        %85 = memref.load %arg3[%84] : memref<10xi32, #tpu.memory_space<smem>>
        %c8_i32_32 = arith.constant 8 : i32
        %86 = arith.muli %85, %c8_i32_32 : i32
        %87 = tpu.assume_multiple %86, 8 : i32
        %88 = arith.index_cast %62 : i32 to index
        %89 = memref.load %arg2[%88] : memref<10xi32, #tpu.memory_space<smem>>
        %c512_i32_33 = arith.constant 512 : i32
        %90 = arith.muli %89, %c512_i32_33 : i32
        %91 = tpu.assume_multiple %90, 512 : i32
        %c1_i32_34 = arith.constant 1 : i32
        %c0_i32_35 = arith.constant 0 : i32
        %c0_i32_36 = arith.constant 0 : i32
        %92 = tpu.memref_slice %arg9[%61, %c0_i32_35, %c0_i32_36] : memref<2x8x512xf32, #tpu.memory_space<vmem>> -> memref<1x8x512xf32, #tpu.memory_space<vmem>>
        %93 = tpu.memref_squeeze %92 : memref<1x8x512xf32, #tpu.memory_space<vmem>> -> memref<8x512xf32, #tpu.memory_space<vmem>>
        %94 = tpu.memref_slice %arg7[%arg0, %87, %91] : memref<2x32x2048xf32, #tpu.memory_space<any>> -> memref<1x8x512xf32, #tpu.memory_space<any>>
        %95 = tpu.memref_squeeze %94 : memref<1x8x512xf32, #tpu.memory_space<any>> -> memref<8x512xf32, #tpu.memory_space<any>>
        %96 = tpu.memref_slice %arg10[%61, %c1_i32_34] : memref<2x2x!tpu.dma_semaphore, #tpu.memory_space<semaphore_mem>> -> memref<1x1x!tpu.dma_semaphore, #tpu.memory_space<semaphore_mem>>
        %97 = tpu.memref_squeeze %96 : memref<1x1x!tpu.dma_semaphore, #tpu.memory_space<semaphore_mem>> -> memref<!tpu.dma_semaphore, #tpu.memory_space<semaphore_mem>>
        tpu.wait_dma2 semaphore(%97 : memref<!tpu.dma_semaphore, #tpu.memory_space<semaphore_mem>>) src(%93 : memref<8x512xf32, #tpu.memory_space<vmem>>) dst(%95 : memref<8x512xf32, #tpu.memory_space<any>>)
      } else {
      }
    } else {
    }
    %c9_i32 = arith.constant 9 : i32
    %58 = arith.cmpi eq, %arg1, %c9_i32 : i32
    %59 = arith.extui %58 : i1 to i32
    %c0_i32_23 = arith.constant 0 : i32
    %60 = arith.cmpi ne, %59, %c0_i32_23 : i32
    scf.if %60 {
      %61 = arith.index_cast %arg1 : i32 to index
      %62 = memref.load %arg2[%61] : memref<10xi32, #tpu.memory_space<smem>>
      %c8_i32_24 = arith.constant 8 : i32
      %63 = arith.muli %62, %c8_i32_24 : i32
      %64 = tpu.assume_multiple %63, 8 : i32
      %65 = arith.index_cast %arg1 : i32 to index
      %66 = memref.load %arg3[%65] : memref<10xi32, #tpu.memory_space<smem>>
      %c512_i32_25 = arith.constant 512 : i32
      %67 = arith.muli %66, %c512_i32_25 : i32
      %68 = tpu.assume_multiple %67, 512 : i32
      %c0_i32_26 = arith.constant 0 : i32
      %c0_i32_27 = arith.constant 0 : i32
      %c0_i32_28 = arith.constant 0 : i32
      %69 = tpu.memref_slice %arg8[%9, %c0_i32_27, %c0_i32_28] : memref<2x8x512xf32, #tpu.memory_space<vmem>> -> memref<1x8x512xf32, #tpu.memory_space<vmem>>
      %70 = tpu.memref_squeeze %69 : memref<1x8x512xf32, #tpu.memory_space<vmem>> -> memref<8x512xf32, #tpu.memory_space<vmem>>
      %71 = tpu.memref_slice %arg7[%arg0, %64, %68] : memref<2x32x2048xf32, #tpu.memory_space<any>> -> memref<1x8x512xf32, #tpu.memory_space<any>>
      %72 = tpu.memref_squeeze %71 : memref<1x8x512xf32, #tpu.memory_space<any>> -> memref<8x512xf32, #tpu.memory_space<any>>
      %73 = tpu.memref_slice %arg10[%9, %c0_i32_26] : memref<2x2x!tpu.dma_semaphore, #tpu.memory_space<semaphore_mem>> -> memref<1x1x!tpu.dma_semaphore, #tpu.memory_space<semaphore_mem>>
      %74 = tpu.memref_squeeze %73 : memref<1x1x!tpu.dma_semaphore, #tpu.memory_space<semaphore_mem>> -> memref<!tpu.dma_semaphore, #tpu.memory_space<semaphore_mem>>
      tpu.wait_dma2 semaphore(%74 : memref<!tpu.dma_semaphore, #tpu.memory_space<semaphore_mem>>) src(%70 : memref<8x512xf32, #tpu.memory_space<vmem>>) dst(%72 : memref<8x512xf32, #tpu.memory_space<any>>)
      %75 = arith.index_cast %arg1 : i32 to index
      %76 = memref.load %arg2[%75] : memref<10xi32, #tpu.memory_space<smem>>
      %77 = arith.index_cast %arg1 : i32 to index
      %78 = memref.load %arg3[%77] : memref<10xi32, #tpu.memory_space<smem>>
      %79 = arith.cmpi ne, %76, %78 : i32
      %80 = arith.extui %79 : i1 to i32
      %c0_i32_29 = arith.constant 0 : i32
      %81 = arith.cmpi ne, %80, %c0_i32_29 : i32
      scf.if %81 {
        %82 = arith.index_cast %arg1 : i32 to index
        %83 = memref.load %arg3[%82] : memref<10xi32, #tpu.memory_space<smem>>
        %c8_i32_30 = arith.constant 8 : i32
        %84 = arith.muli %83, %c8_i32_30 : i32
        %85 = tpu.assume_multiple %84, 8 : i32
        %86 = arith.index_cast %arg1 : i32 to index
        %87 = memref.load %arg2[%86] : memref<10xi32, #tpu.memory_space<smem>>
        %c512_i32_31 = arith.constant 512 : i32
        %88 = arith.muli %87, %c512_i32_31 : i32
        %89 = tpu.assume_multiple %88, 512 : i32
        %c1_i32_32 = arith.constant 1 : i32
        %c0_i32_33 = arith.constant 0 : i32
        %c0_i32_34 = arith.constant 0 : i32
        %90 = tpu.memref_slice %arg9[%9, %c0_i32_33, %c0_i32_34] : memref<2x8x512xf32, #tpu.memory_space<vmem>> -> memref<1x8x512xf32, #tpu.memory_space<vmem>>
        %91 = tpu.memref_squeeze %90 : memref<1x8x512xf32, #tpu.memory_space<vmem>> -> memref<8x512xf32, #tpu.memory_space<vmem>>
        %92 = tpu.memref_slice %arg7[%arg0, %85, %89] : memref<2x32x2048xf32, #tpu.memory_space<any>> -> memref<1x8x512xf32, #tpu.memory_space<any>>
        %93 = tpu.memref_squeeze %92 : memref<1x8x512xf32, #tpu.memory_space<any>> -> memref<8x512xf32, #tpu.memory_space<any>>
        %94 = tpu.memref_slice %arg10[%9, %c1_i32_32] : memref<2x2x!tpu.dma_semaphore, #tpu.memory_space<semaphore_mem>> -> memref<1x1x!tpu.dma_semaphore, #tpu.memory_space<semaphore_mem>>
        %95 = tpu.memref_squeeze %94 : memref<1x1x!tpu.dma_semaphore, #tpu.memory_space<semaphore_mem>> -> memref<!tpu.dma_semaphore, #tpu.memory_space<semaphore_mem>>
        tpu.wait_dma2 semaphore(%95 : memref<!tpu.dma_semaphore, #tpu.memory_space<semaphore_mem>>) src(%91 : memref<8x512xf32, #tpu.memory_space<vmem>>) dst(%93 : memref<8x512xf32, #tpu.memory_space<any>>)
      } else {
      }
    } else {
    }
    return
  }
  func.func @transform_0(%arg0: i32, %arg1: i32, %arg2: memref<10xi32, #tpu.memory_space<smem>>, %arg3: memref<10xi32, #tpu.memory_space<smem>>) -> (i32, i32, i32, i32) {
    %0 = arith.index_cast %arg1 : i32 to index
    %1 = memref.load %arg2[%0] : memref<10xi32, #tpu.memory_space<smem>>
    %2 = arith.index_cast %arg1 : i32 to index
    %3 = memref.load %arg3[%2] : memref<10xi32, #tpu.memory_space<smem>>
    %c0_i32 = arith.constant 0 : i32
    %c0_i32_0 = arith.constant 0 : i32
    return %arg0, %1, %3, %c0_i32 : i32, i32, i32, i32
  }
  func.func @transform_1(%arg0: i32, %arg1: i32, %arg2: memref<10xi32, #tpu.memory_space<smem>>, %arg3: memref<10xi32, #tpu.memory_space<smem>>) -> (i32, i32, i32, i32) {
    %0 = arith.index_cast %arg1 : i32 to index
    %1 = memref.load %arg3[%0] : memref<10xi32, #tpu.memory_space<smem>>
    %2 = arith.index_cast %arg1 : i32 to index
    %3 = memref.load %arg2[%2] : memref<10xi32, #tpu.memory_space<smem>>
    %c0_i32 = arith.constant 0 : i32
    %c0_i32_0 = arith.constant 0 : i32
    return %arg0, %1, %3, %c0_i32 : i32, i32, i32, i32
  }
  func.func @transform_2(%arg0: i32, %arg1: i32, %arg2: memref<10xi32, #tpu.memory_space<smem>>, %arg3: memref<10xi32, #tpu.memory_space<smem>>) -> (i32, i32) {
    %c0_i32 = arith.constant 0 : i32
    %c0_i32_0 = arith.constant 0 : i32
    %c0_i32_1 = arith.constant 0 : i32
    return %c0_i32, %c0_i32_0 : i32, i32
  }
}

</mosaic_0001>

<bundles_post_ra>
// kernel: tpu_custom_call.1
= control target key start
LH: loop header
LB: loop body
LE: loop exit
PB: predicated region body
PF: predicated region fallthrough
CT: control target
= control target key end

     0   :  { %s1826_s18 = smov [#allocation6]   ;;  %s2490_s0 = inlined_call_operand.hbm [shape: s32[10], index: 0, kind: input, shape index: {}]   ;;  %s2491_s2 = inlined_call_operand.hbm [shape: f32[2,32,32,32], index: 2, kind: input, shape index: {}]   ;;  %s2492_s3 = inlined_call_operand.hbm [shape: f32[2,32,32,32], index: 3, kind: input, shape index: {}]   ;;  %s2493_s4 = inlined_call_operand.hbm [shape: f32[32,64], index: 4, kind: input, shape index: {}]   ;;  %s2494_s5 = inlined_call_operand.hbm [shape: f32[2,32,2048], index: 5, kind: output, shape index: {}]   ;;  %s2495_s1 = inlined_call_operand.vmem [shape: s32[10], index: 1, kind: input, shape index: {}]  }
   0x1   :  { %2519 = sst [smem:[#allocation50_spill]] %s2491_s2  ;;  %s12_s23 = sshll.u32 %s2495_s1, 4  ;;  %s13_s23 = int_to_ptr.vmem [resolvable:$true] %s12_s23 }
   0x2   :  { %2520 = sst [smem:[#allocation51_spill]] %s2492_s3  ;;  %s1566_s24 = scalar_lea.vmem %s13_s23, 16 }
   0x3   :  { %2521 = sst [smem:[#allocation52_spill]] %s2493_s4  ;;  %p1567_p0 = scmp.ne.s32.totalorder %s13_s23, %s1566_s24 }
   0x4   :  { %2522 = sst [smem:[#allocation53_spill]] %s2494_s5  ;;  %p1571_p1 = scmp.lt.s32.totalorder %s13_s23, %s13_s23 }
   0x5   :  { %11 = dma.hbm_to_smem %s2490_s0, 16, %s1826_s18, [#allocation5] }
   0x6   :  { %p1572_p2 = scmp.lt.s32.totalorder %s1566_s24, %s1566_s24 }
   0x8   :  { %p1573_p3 = por %p1572_p2, %p1571_p1 }
   0xa   :  { %p1574_p4 = pnand %p1573_p3, %p1567_p0 }
   0xc   :  { %1577 = shalt.err (!%p1574_p4)  }
   0xd   :  { %s1827_s25 = smov [#allocation7]  }
   0xe   :  { %15 = dma.vmem_to_smem %s13_s23, 16, %s1827_s25, [#allocation5] }
   0xf   :  { %1752 = dma.done.wait [#allocation5], 32 }
  0x10   :  { %1753 = vsyncadd [#allocation5], 4294967264 }
  0x11   :  { %17 = sfence }
  0x12   :  { %18 = vsyncpa [#allocation9], 0 }
  0x13   :  { %20 = vsyncpa [#allocation9 + $0x1], 0 }
  0x14   :  { %21 = vsyncpa [#allocation11], 0 }
  0x15   :  { %23 = vsyncpa [#allocation11 + $0x1], 0  ;;  %s1875_s0 = smov 0   ;;  %s1877_s1 = smov 0  }
  0x16   :  { %s1879_s26 = smov 0   ;;  %s1881_s27 = smov 0  }
  0x17   :  { %s1883_s28 = smov 0   ;;  %s1885_s29 = smov 0  }
  0x18   :  { %s1887_s30 = smov 0   ;;  %s1889_s6 = smov 0  }
  0x19   :  { %s1891_s7 = smov 0   ;;  %s1893_s8 = smov 0  }
  0x1a   :  { %s1895_s9 = smov 0  }
  0x1b LB: > { %2523 = sst [smem:[#allocation41_spill]] %s1804_s29  ;;  %s2497_s10 = sadd.s32 4294967295, %s1824_s9   ;;  %s1824_s9 = sphi %s1895_s9, %s29_s9   ;;  %s1820_s8 = sphi %s1893_s8, %s2576_s8   ;;  %s1816_s7 = sphi %s1891_s7, %s2575_s7   ;;  %s1812_s6 = sphi %s1889_s6, %s2574_s6   ;;  %s1808_s30 = sphi %s1887_s30, %s2566_s30   ;;  %s1804_s29 = sphi %s1885_s29, %s2565_s29   ;;  %s1800_s28 = sphi %s1883_s28, %s2573_s28   ;;  %s1796_s27 = sphi %s1881_s27, %s2572_s27   ;;  %s1792_s26 = sphi %s1879_s26, %s2571_s26   ;;  %s1788_s1 = sphi %s1877_s1, %s2570_s1   ;;  %s1784_s0 = sphi %s1875_s0, %s2569_s0  }
  0x1c   : > { %2524 = sst [smem:[#allocation42_spill]] %s1808_s30  ;;  %p2496_p5 = scmp.eq.s32.totalorder %s1824_s9, 0 }
  0x1d   : > { %2525 = sst [smem:[#allocation43_spill]] %s1812_s6  ;;  %p66_p6 = scmp.ne.s32.totalorder %s1800_s28, %s1796_s27 }
  0x1e   : > { %2526 = sst [smem:[#allocation44_spill]] %s1816_s7  ;;  %p1931_p7 = scmp.eq.s32.totalorder %s2497_s10, 0 }
  0x1f   : > { %p86_p8 = scmp.ne.s32.totalorder %s1792_s26, %s1788_s1  ;;  %p93_p10 = scmp.ne.s32.totalorder %s1788_s1, %s1784_s0 }
  0x20   : > { %s2527_s11 = scalar_select %p1931_p7, 1, 0 }
  0x21   : > { %p1939_p9 = por %p1931_p7, %p66_p6  ;;  %p1946_p11 = por %p86_p8, %p2496_p5 }
  0x22   : > { %2528 = sst [smem:[#allocation45_spill]] %s2527_s11  ;;  %p1953_p13 = por %p93_p10, %p1931_p7 }
  0x23   : > { %s2529_s12 = scalar_select %p1939_p9, 1, 0 }
  0x24   : > { %s2530_s13 = scalar_select %p1946_p11, 1, 0 }
  0x25   : > { %s2531_s14 = scalar_select %p1953_p13, 1, 0 }
  0x26   : > { %p1452_p0 = scmp.ge.s32.totalorder %s1824_s9, 1  ;;  %s1828_s15 = smov [#allocation12]  }
  0x27   : > { %s121_s16 = sshll.u32 %s1828_s15, 4  ;;  %s122_s16 = int_to_ptr.vmem [resolvable:$true] %s121_s16 }
  0x28   : > { %p1960_p1 = pnand %p1452_p0, %p1931_p7  ;;  %s1589_s18 = scalar_lea.vmem %s122_s16, 512 }
  0x29   : > { %p1590_p3 = scmp.ne.s32.totalorder %s122_s16, %s1589_s18  ;;  %p1597_p8 = scmp.lt.s32.totalorder %s122_s16, %s122_s16 }
  0x2a   : > { %p1580_p2 = pneg %p1960_p1  ;;  %p1598_p10 = scmp.lt.s32.totalorder %s1589_s18, %s1589_s18 }
  0x2c   : > { %p1592_p4 = pnand %p1590_p3, %p1580_p2  ;;  %p1599_p12 = por %p1598_p10, %p1597_p8 }
  0x2e   : > { %p1593_p6 = pneg %p1592_p4 }
  0x30   : > { %p1600_p5 = pnand %p1599_p12, %p1593_p6 }
  0x32   : > { %1603 = shalt.err (!%p1600_p5)
}
  0x33   : > { %s2498_s19 = smov 128   ;;  %s2500_s20 = smov 8  }
  0x34   : > { %s2533_s4 = sld [smem:[#allocation52_spill]]  ;;  %p2508_p5 = scmp.lt.s32.totalorder %s1824_s9, 20 }
  0x35   : > { %s35_s24 = sadd.s32 1, %s1816_s7  ;;  %s38_s25 = sadd.s32 1, %s1820_s8 }
  0x36   : > { %p1979_p12 = pnand %p2508_p5, %p1946_p11  ;;  %p36_p0 = scmp.ge.s32.totalorder %s35_s24, 10 }
  0x37   : > { %s42_s0 = sld [smem:[#allocation6 + %s1816_s7]]  ;;  %p59_p2 = scmp.ne.s32.totalorder %s1804_s29, %s1800_s28 }
  0x38   : > { %s2534_s23 = scalar_select %p1979_p12, 1, 0 }
  0x39   : > { %s43_s27 = sld [smem:[#allocation7 + %s1816_s7]]  ;;  %s2578_s24 = smov (%p36_p0, %s35_s24), 0 }
  0x3a   : > { %1418 = dma.hbm_to_vmem [thread:$0]  (!%p1960_p1), %s2533_s4, 512, %s122_s16, [#allocation11], %s2498_s19, %s2498_s19, %s2500_s20  }
  0x3b   : > { %2535 = sst [smem:[#allocation46_spill]] %s2578_s24  ;;  %s2580_s25 = smov (!%p36_p0, %s38_s25), %s1820_s8 }
  0x3c   : > { %s44_s15 = sld [smem:[#allocation6 + %s2578_s24]]  ;;  %p40_p1 = scmp.ge.s32.totalorder %s2580_s25, 2 }
  0x3d   : > { %s45_s16 = sld [smem:[#allocation7 + %s2578_s24]]  ;;  %s53_s6 = sadd.s32 1, %s1804_s29 }
  0x3e   : > { %s69_s17 = sld [smem:[#allocation7 + %s1816_s7]]  ;;  %s2582_s25 = smov (%p40_p1, %s2580_s25), 0 }
  0x3f   : > { %2536 = sst [smem:[#allocation47_spill]] %s2582_s25  ;;  %s46_s21 = ssub.s32 %s1820_s8, %s2582_s25 }
  0x40   : > { %s70_s18 = sld [smem:[#allocation6 + %s1816_s7]]  ;;  %p2537_p4 = scmp.eq.s32.totalorder %s1824_s9, 0 }
  0x41   : > { %s71_s22 = sld [smem:[#allocation7 + %s2578_s24]] }
  0x42   : > { %s47_s10 = ssub.s32 %s42_s0, %s44_s15  ;;  %s72_s19 = sld [smem:[#allocation6 + %s2578_s24]] }
  0x43   : > { %s48_s20 = sor.u32 %s47_s10, %s46_s21  ;;  %s49_s4 = ssub.s32 %s43_s27, %s45_s16 }
  0x44   : > { %s50_s5 = sor.u32 %s49_s4, %s48_s20  ;;  %p2005_p6 = por %p2537_p4, %p59_p2 }
  0x45   : > { %p51_p3 = scmp.eq.s32.totalorder %s50_s5, 0  ;;  %s2505_s0 = sand.u32 1, %s1804_s29  }
  0x46   : > { %s80_s20 = sadd.s32 1, %s1792_s26  ;;  %s1252_s16 = sshll.u32 %s2505_s0, 6 }
  0x47   : > { %s2011_s15 = scalar_select %p51_p3, %s1804_s29, %s53_s6  }
  0x48   : > { %s74_s10 = ssub.s32 %s69_s17, %s71_s22  ;;  %s76_s4 = ssub.s32 %s70_s18, %s72_s19 }
  0x49   : > { %2539 = sst [smem:[#allocation48_spill]] %s2011_s15  ;;  %s75_s5 = sor.u32 %s74_s10, %s46_s21 }
  0x4a   : > { %s77_s27 = sor.u32 %s76_s4, %s75_s5  ;;  %p2020_p10 = pnand %p2508_p5, %p2005_p6 }
  0x4b   : > { %p78_p8 = scmp.eq.s32.totalorder %s77_s27, 0  ;;  %s2515_s10 = sshll.u32 %s1820_s8, 7 }
  0x4c   : > { %s1391_s6 = scalar_select %p2005_p6, [#allocation6], [#allocation19] }
  0x4d   : > { %s2027_s19 = scalar_select %p78_p8, %s1792_s26, %s80_s20  }
  0x4e   : > { %s1392_s17 = scalar_select %p2005_p6, %s1816_s7, 0 }
  0x4f   : > { %2541 = sst [smem:[#allocation49_spill]] %s2027_s19  ;;  %s2584_s6 = smov (!%p2508_p5, %s1391_s6), [#allocation25] }
  0x50   : > { %s2586_s17 = smov (!%p2508_p5, %s1392_s17), 0  ;;  %s139_s27 = scalar_lea.vmem [#allocation8], %s1252_s16 }
  0x51   : > { %s1393_s18 = scalar_select %p2005_p6, [#allocation7], [#allocation20] }
  0x52   : > { %s140_s21 = sld [smem:[%s2584_s6 + %s2586_s17]]  ;;  %s152_s0 = sshll.u32 %s139_s27, 4  ;;  %s2052_s0 = int_to_ptr.vmem [resolvable:$true] %s152_s0 }
  0x53   : > { %s2588_s18 = smov (!%p2508_p5, %s1393_s18), [#allocation26]  ;;  %s2542_s2 = sld [smem:[#allocation50_spill]] }
  0x54   : > { %s141_s22 = sld [smem:[%s2588_s18 + %s2586_s17]]  ;;  %s164_s18 = sand.u32 1, %s1792_s26  }
  0x55   : > { %s1396_s4 = scalar_select %p1946_p11, [#allocation7], [#allocation21] }
  0x56   : > { %s1397_s20 = scalar_select %p1946_p11, %s1816_s7, 0 }
  0x57   : > { %s2590_s4 = smov (!%p2508_p5, %s1396_s4), [#allocation27]  ;;  %p1606_p1 = pneg %p2020_p10 }
  0x58   : > { %s1321_s5 = sshll.u32 %s140_s21, 5  ;;  %s2592_s20 = smov (!%p2508_p5, %s1397_s20), 0 }
  0x59   : > { %s2063_s16 = sld [smem:[%s2590_s4 + %s2592_s20]]  ;;  %s2543_s21 = sand.u32 1, %s1804_s29  }
  0x5a   : > { %s147_s30 = sadd.s32 %s1321_s5, %s141_s22  ;;  %s2067_s27 = scalar_lea.sflag [#allocation9], %s2543_s21 }
  0x5b   : > { %s149_s6 = sadd.s32 %s2515_s10, %s147_s30  ;;  %s1609_s24 = scalar_lea.hbm %s2542_s2, 32768 }
  0x5c   : > { %s1256_s17 = sshll.u32 %s149_s6, 7 }
  0x5d   : > { %s2060_s7 = scalar_lea.hbm %s2542_s2, %s1256_s17 }
  0x5e   : > { %s1604_s22 = scalar_lea.hbm %s2060_s7, 1024  ;;  %p1610_p4 = scmp.lt.s32.totalorder %s2060_s7, %s2542_s2 }
  0x5f   : > { %p1605_p0 = scmp.ne.s32.totalorder %s2060_s7, %s1604_s22  ;;  %p1611_p6 = scmp.lt.s32.totalorder %s1609_s24, %s1604_s22 }
  0x61   : > { %p1607_p2 = pnand %p1606_p1, %p1605_p0  ;;  %p1612_p8 = por %p1611_p6, %p1610_p4 }
  0x63   : > { %p1608_p3 = pneg %p1607_p2 }
  0x65   : > { %p1613_p5 = pnand %p1612_p8, %p1608_p3 }
  0x67   : > { %1616 = shalt.err (!%p1613_p5)
}
  0x68   : > { %s1617_s4 = scalar_lea.vmem %s2052_s0, 1024  ;;  %s1831_s17 = smov [#allocation8]  }
  0x69   : > { %p1618_p7 = scmp.ne.s32.totalorder %s2052_s0, %s1617_s4  ;;  %s1622_s21 = sshll.u32 %s1831_s17, 4  ;;  %s1623_s21 = int_to_ptr.vmem [resolvable:$false] %s1622_s21 }
  0x6a   : > { %s1624_s5 = scalar_lea.vmem %s1623_s21, 2048  ;;  %p1625_p2 = scmp.lt.s32.totalorder %s2052_s0, %s1623_s21 }
  0x6b   : > { %p1620_p13 = pnand %p1618_p7, %p1606_p1  ;;  %p1626_p9 = scmp.lt.s32.totalorder %s1624_s5, %s1617_s4 }
  0x6d   : > { %p1621_p0 = pneg %p1620_p13  ;;  %p1627_p12 = por %p1626_p9, %p1625_p2 }
  0x6f   : > { %p1628_p11 = pnand %p1627_p12, %p1621_p0 }
  0x71   : > { %1631 = shalt.err (!%p1628_p11)
}
  0x72   : > { %s1832_s22 = smov 512   ;;  %s2544_s30 = smov 8  }
  0x73   : > { %s2545_s24 = smov 128   ;;  %p2546_p7 = scmp.ne.s32.totalorder %s2530_s13, 0 }
  0x74   : > { %1426 = dma.hbm_to_vmem [thread:$0]  (!%p2020_p10), %s2060_s7, 1024, %s2052_s0, %s2067_s27, %s1832_s22, %s2545_s24, %s2544_s30  }
  0x75   : > { %s1398_s15 = scalar_select %p2546_p7, [#allocation6], [#allocation22] }
  0x76   : > { %s1257_s6 = sshll.u32 %s164_s18, 6  ;;  %p2547_p9 = scmp.lt.s32.totalorder %s1824_s9, 20 }
  0x77   : > { %s1322_s4 = sshll.u32 %s2063_s16, 5  ;;  %s162_s17 = sand.u32 1, %s1824_s9  }
  0x78   : > { %s2594_s15 = smov (!%p2547_p9, %s1398_s15), [#allocation28]  ;;  %s166_s21 = scalar_lea.vmem [#allocation10], %s1257_s6 }
  0x79   : > { %s168_s25 = sld [smem:[%s2594_s15 + %s2592_s20]]  ;;  %s179_s5 = sshll.u32 %s166_s21, 4  ;;  %s2102_s5 = int_to_ptr.vmem [resolvable:$true] %s179_s5 }
  0x7a   : > { %s2548_s2 = sshll.u32 %s1820_s8, 7  ;;  %s2549_s3 = sld [smem:[#allocation51_spill]] }
  0x7b   : > { %s2109_s0 = scalar_lea.sflag [#allocation11], %s162_s17  ;;  %p2550_p13 = scmp.ne.s32.totalorder %s2534_s23, 0 }
  0x7d   : > { %p1634_p5 = pneg %p2550_p13 }
  0x7f   : > { %s174_s10 = sadd.s32 %s1322_s4, %s168_s25 }
  0x80   : > { %s176_s29 = sadd.s32 %s2548_s2, %s174_s10 }
  0x81   : > { %s1261_s19 = sshll.u32 %s176_s29, 7  ;;  %s1637_s29 = scalar_lea.hbm %s2549_s3, 32768 }
  0x82   : > { %s2107_s13 = scalar_lea.hbm %s2549_s3, %s1261_s19 }
  0x83   : > { %s1632_s20 = scalar_lea.hbm %s2107_s13, 1024  ;;  %p1638_p1 = scmp.lt.s32.totalorder %s2107_s13, %s2549_s3 }
  0x84   : > { %p1633_p11 = scmp.ne.s32.totalorder %s2107_s13, %s1632_s20  ;;  %p1639_p3 = scmp.lt.s32.totalorder %s1637_s29, %s1632_s20 }
  0x86   : > { %p1635_p12 = pnand %p1634_p5, %p1633_p11  ;;  %p1640_p4 = por %p1639_p3, %p1638_p1 }
  0x88   : > { %p1636_p10 = pneg %p1635_p12 }
  0x8a   : > { %p1641_p6 = pnand %p1640_p4, %p1636_p10 }
  0x8c   : > { %1644 = shalt.err (!%p1641_p6)
}
  0x8d   : > { %s1645_s11 = scalar_lea.vmem %s2102_s5, 1024  ;;  %s1833_s19 = smov [#allocation10]  }
  0x8e   : > { %p1646_p8 = scmp.ne.s32.totalorder %s2102_s5, %s1645_s11  ;;  %s1650_s27 = sshll.u32 %s1833_s19, 4  ;;  %s1651_s27 = int_to_ptr.vmem [resolvable:$false] %s1650_s27 }
  0x8f   : > { %s1652_s15 = scalar_lea.vmem %s1651_s27, 2048  ;;  %p1653_p7 = scmp.lt.s32.totalorder %s2102_s5, %s1651_s27 }
  0x90   : > { %p1648_p0 = pnand %p1646_p8, %p1634_p5  ;;  %p1654_p9 = scmp.lt.s32.totalorder %s1652_s15, %s1645_s11 }
  0x92   : > { %p1649_p2 = pneg %p1648_p0  ;;  %p1655_p11 = por %p1654_p9, %p1653_p7 }
  0x94   : > { %p1656_p12 = pnand %p1655_p11, %p1649_p2 }
  0x96   : > { %1659 = shalt.err (!%p1656_p12)
}
  0x97   : > { %1433 = dma.hbm_to_vmem [thread:$0]  (!%p2550_p13), %s2107_s13, 1024, %s2102_s5, %s2109_s0, %s1832_s22, %s2545_s24, %s2544_s30  }
  0x98   : > { %p2551_p5 = scmp.lt.s32.totalorder %s1824_s9, 1 }
  0x99   : > { %s191_s6 = sand.u32 (!%p2551_p5), 1, %s1800_s28   ;;  %p2552_p10 = scmp.ne.s32.totalorder (!%p2551_p5), %s2529_s12, 0 }
  0x9a   : > { %189 = sbr.rel (%p2551_p5) target bundleno = 611 (0x263), region = 32  ;;  %s1264_s25 = sshll.u32 (!%p2551_p5), %s191_s6, 6 }
  0x9b   : > { %s192_s4 = scalar_lea.sflag (!%p2551_p5), [#allocation9], %s191_s6  ;;  %s2136_s17 = scalar_lea.vmem (!%p2551_p5), [#allocation8], %s1264_s25 }
  0x9f   : > { %1755 = dma.done.wait (%p2552_p10), %s192_s4, 1024  }
  0xa0   : > { %1757 = vsyncadd (%p2552_p10), %s192_s4, 4294966272  ;;  %s2553_s23 = sadd.s32 4294967295, %s1824_s9   ;;  %s202_s30 = sand.u32 1, %s1788_s1  }
  0xa1   : > { %s200_s22 = sand.u32 1, %s2553_s23   ;;  %s1265_s24 = sshll.u32 %s202_s30, 6 }
  0xa2   : > { %s201_s21 = scalar_lea.sflag [#allocation11], %s200_s22  ;;  %s2145_s5 = scalar_lea.vmem [#allocation10], %s1265_s24 }
  0xa3   : > { %p2554_p13 = scmp.ne.s32.totalorder %s2531_s14, 0 }
  0xa5   : > { %1759 = dma.done.wait (%p2554_p13), %s201_s21, 1024  }
  0xa6   : > { %1761 = vsyncadd (%p2554_p13), %s201_s21, 4294966272  ;;  %s2555_s7 = sld [smem:[#allocation45_spill]] }
  0xac   : > { %p2556_p1 = scmp.ne.s32.totalorder %s2555_s7, 0 }
  0xae   : > { %1763 = dma.done.wait (%p2556_p1), [#allocation11], 512  }
  0xaf   : > { %1765 = vsyncadd (%p2556_p1), [#allocation11], 4294966784  ;;  %vm269_vm0 = vcmask 261120   ;;  %v268_v0 = vld [vmem:[#allocation12 + $0x18] sm:$0xff]  ;;  %v267_v1 = vld [vmem:[#allocation12 + $0x10] sm:$0xff]  ;;  %s2557_s12 = sld [smem:[#allocation42_spill]]  ;;  %v533_v24 = vlaneseq }
  0xb0   : > { %1369 = vmatprep.subr.mxu1 %v268_v0  ;;  %v257_v2 = vld [vmem:[%s2145_s5] sm:$0xff]  ;;  %1349 = vmatprep.subr.mxu0 %v268_v0  ;;  %v266_v3 = vld [vmem:[#allocation12 + $0x8] sm:$0xff]  ;;  %v259_v6 = vld [vmem:[%s2145_s5 + $0x10] sm:$0xff]  ;;  %v1834_v22 = vmov 1983009808   ;;  %s1836_s19 = smov 64  }
  0xb1   : > { %1370 = vmatpush3.msra.mxu1 %v268_v0  ;;  %1377 = vmatprep.mubr.msk.f32.mxu1 %vm269_vm0, %v257_v2  ;;  %v265_v4 = vld [vmem:[#allocation12] sm:$0xff]  ;;  %v258_v5 = vld [vmem:[%s2145_s5 + $0x8] sm:$0xff]  ;;  %v251_v9 = vld [vmem:[%s2136_s17 + $0x10] sm:$0xff]  ;;  %v531_v23 = vunpack.c.l.s4 %v1834_v22  ;;  %v534_v29 = vshrl.u32 %v533_v24, 7  ;;  %v1835_v33 = vmov 1934713408  }
  0xb2   : > { %1371 = vmatprep.subr.mxu1 %v267_v1  ;;  %1350 = vmatpush3.msra.mxu0 %v268_v0  ;;  %v249_v7 = vld [vmem:[%s2136_s17] sm:$0xff]  ;;  %v250_v8 = vld [vmem:[%s2136_s17 + $0x8] sm:$0xff]  ;;  %v260_v10 = vld [vmem:[%s2145_s5 + $0x18] sm:$0xff]  ;;  %v595_v34 = vunpack.c.l.s4 %v1835_v33  ;;  %s2559_s15 = sld [smem:[#allocation43_spill]]  ;;  %vm824_vm1 = vcmask 523264  }
  0xb3   : > { %1372 = vmatpush3.msra.mxu1 %v267_v1  ;;  %1351 = vmatprep.subr.mxu0 %v267_v1  ;;  %v261_v11 = vld [vmem:[%s2145_s5 + $0x20] sm:$0xff]  ;;  %v252_v12 = vld [vmem:[%s2136_s17 + $0x18] sm:$0xff]  ;;  %v262_v14 = vld [vmem:[%s2145_s5 + $0x28] sm:$0xff]  ;;  %v532_v28 = vunpack.c.0.s8 %v531_v23 }
  0xb4   : > { %1373 = vmatprep.subr.mxu1 %v266_v3  ;;  %1352 = vmatpush3.msra.mxu0 %v267_v1  ;;  %v253_v13 = vld [vmem:[%s2136_s17 + $0x20] sm:$0xff]  ;;  %v263_v15 = vld [vmem:[%s2145_s5 + $0x30] sm:$0xff]  ;;  %v254_v16 = vld [vmem:[%s2136_s17 + $0x28] sm:$0xff]  ;;  %v596_v43 = vunpack.c.0.s8 %v595_v34 }
  0xb5   : > { %1374 = vmatpush3.msra.mxu1 %v266_v3  ;;  %1353 = vmatprep.subr.mxu0 %v266_v3  ;;  %v255_v17 = vld [vmem:[%s2136_s17 + $0x30] sm:$0xff]  ;;  %v264_v18 = vld [vmem:[%s2145_s5 + $0x38] sm:$0xff]  ;;  %p235_p3 = scmp.lt.s32.totalorder %s2557_s12, 0  ;;  %s236_s14 = ssub.s32 0, %s2557_s12  ;;  %v2195_v37 = vsub.s32 %v532_v28, %v534_v29 }
  0xb6   : > { %1375 = vmatprep.subr.mxu1 %v265_v4  ;;  %1354 = vmatpush3.msra.mxu0 %v266_v3  ;;  %v256_v19 = vld [vmem:[%s2136_s17 + $0x38] sm:$0xff]  ;;  %s1267_s13 = smin.u32 %s2557_s12, %s236_s14  ;;  %v2201_v56 = vsub.s32 %v596_v43, %v534_v29  ;;  %s2216_s18 = sld [smem:[#allocation6 + %s2557_s12]] }
  0xb7   : > { %1376 = vmatpush3.msra.mxu1 %v265_v4  ;;  %1355 = vmatprep.subr.mxu0 %v265_v4  ;;  %s238_s0 = sand.u32 1, %s1267_s13   ;;  %s2219_s16 = sld [smem:[#allocation7 + %s2557_s12]] }
  0xb8   : > { %1378 = vmatmul.mubr.msk.f32.vlgmr.msra.gmra.mxu1 %vm269_vm0, %v258_v5  ;;  %1356 = vmatpush3.msra.mxu0 %v265_v4  ;;  %s239_s20 = ssub.s32 0, %s238_s0  ;;  %p1457_p8 = scmp.ge.s32.totalorder %s2557_s12, 1 }
  0xb9   : > { %1380 = vmatprep.mubr.msk.f32.mxu1 %vm269_vm0, %v259_v6  ;;  %1357 = vmatprep.mubr.msk.f32.mxu0 %vm269_vm0, %v249_v7  ;;  %s2596_s20 = smov (!%p235_p3, %s239_s20), %s238_s0  ;;  %s998_s6 = sld [smem:[#allocation6 + %s2557_s12]] }
  0xba   : > { %1358 = vmatmul.mubr.msk.f32.vlgmr.msra.gmra.mxu0 %vm269_vm0, %v250_v8  ;;  %p1269_p4 = scmp.lt.s32.totalorder %s2596_s20, 0  ;;  %s245_s2 = sadd.s32 2, %s2596_s20 }
  0xbb   : > { %1360 = vmatprep.mubr.msk.f32.mxu0 %vm269_vm0, %v251_v9  ;;  %s1000_s25 = sld [smem:[#allocation7 + %s2557_s12]] }
  0xbc   : > { %1381 = vmatmul.mubr.msk.f32.gmra.mxu1 %vm269_vm0, %v260_v10  ;;  %s2598_s2 = smov (!%p1269_p4, %s245_s2), %s2596_s20  ;;  %s1300_s20 = sshll.u32 %s2559_s15, 6 }
  0xbd   : > { %1383 = vmatprep.mubr.msk.f32.mxu1 %vm269_vm0, %v261_v11  ;;  %s1059_s10 = ssub.s32 1, %s2598_s2  ;;  %p2243_p6 = scmp.ne.s32.totalorder %s2216_s18, %s2219_s16 }
  0xbe   : > { %1361 = vmatmul.mubr.msk.f32.gmra.mxu0 %vm269_vm0, %v252_v12  ;;  %s2193_s29 = sshll.u32 %s1059_s10, 1  ;;  %s1323_s10 = sshll.u32 %s2598_s2, 5 }
  0xbf   : > { %1363 = vmatprep.mubr.msk.f32.mxu0 %vm269_vm0, %v253_v13  ;;  %s1406_s4 = scalar_select %p2243_p6, [#allocation7], [#allocation23] }
  0xc0   : > { %1384 = vmatmul.mubr.msk.f32.gmra.mxu1 %vm269_vm0, %v262_v14  ;;  %s1407_s17 = scalar_select %p2243_p6, %s2557_s12, 0 }
  0xc1   : > { %1386 = vmatprep.mubr.msk.f32.mxu1 %vm269_vm0, %v263_v15  ;;  %s1408_s23 = scalar_select %p2243_p6, [#allocation6], [#allocation24] }
  0xc2   : > { %1364 = vmatmul.mubr.msk.f32.gmra.mxu0 %vm269_vm0, %v254_v16  ;;  %s1297_s22 = sshll.u32 %s998_s6, 3  ;;  %s1029_s30 = sld [smem:[%s1406_s4 + %s1407_s17]] }
  0xc3   : > { %1366 = vmatprep.mubr.msk.f32.mxu0 %vm269_vm0, %v255_v17  ;;  %s1298_s24 = sshll.u32 %s1000_s25, 9  ;;  %s1004_s21 = sshra.s32 %s1297_s22, 3 }
  0xc4   : > { %1387 = vmatmul.mubr.msk.f32.gmra.mxu1 %vm269_vm0, %v264_v18  ;;  %s1031_s5 = sld [smem:[%s1408_s23 + %s1407_s17]]  ;;  %s1002_s7 = sshra.s32 %s1298_s24, 7 }
  0xc5   : > { %s1299_s14 = sshll.u32 %s1004_s21, 4  ;;  %s1302_s27 = sshll.u32 %s2598_s2, 1 }
  0xc6   : > { %1367 = vmatmul.mubr.msk.f32.gmra.mxu0 %vm269_vm0, %v256_v19  ;;  %s1007_s0 = sadd.s32 %s1299_s14, %s1002_s7  ;;  %s831_s4 = scalar_lea.vmem [#allocation2], %s1323_s10 }
  0xc7   : > { %s1021_s17 = sshll.u32 %s831_s4, 4  ;;  %s2372_s7 = scalar_lea.sflag [#allocation4], %s1302_s27  ;;  %s1022_s17 = int_to_ptr.vmem [resolvable:$true] %s1021_s17 }
  0xc8   : > { %s1304_s13 = sshll.u32 %s1029_s30, 3  ;;  %s2560_s30 = sld [smem:[#allocation53_spill]] }
  0xc9   : > { %s1035_s16 = sshra.s32 %s1304_s13, 3  ;;  %s1660_s14 = scalar_lea.vmem %s1022_s17, 512 }
  0xca   : > { %s1305_s18 = sshll.u32 %s1031_s5, 9  ;;  %s1306_s6 = sshll.u32 %s1035_s16, 4 }
  0xcb   : > { %s1033_s3 = sshra.s32 %s1305_s18, 7  ;;  %p1661_p0 = scmp.ne.s32.totalorder %s1022_s17, %s1660_s14 }
  0xcc   : > { %s1038_s15 = sadd.s32 %s1306_s6, %s1033_s3  ;;  %s1837_s3 = smov [#allocation2]  }
  0xcd   : > { %s2370_s5 = sadd.s32 %s1300_s20, %s1038_s15  ;;  %s1662_s13 = sshll.u32 %s1837_s3, 4  ;;  %s1663_s13 = int_to_ptr.vmem [resolvable:$false] %s1662_s13 }
  0xce   : > { %s2561_s24 = smov %s2560_s30  ;;  %p1665_p2 = scmp.lt.s32.totalorder %s1022_s17, %s1663_s13 }
 0x178   : > { %v1379_v20 = vpop.f32.mrf.mxu1 }
 0x17a   : > { %v489_v21 = vpop.f32.mrf.mxu1  ;;  %v1359_v25 = vpop.f32.mrf.mxu0 }
 0x17c   : > { %v1382_v26 = vpop.f32.mrf.mxu1  ;;  %v360_v27 = vpop.f32.mrf.mxu0 }
 0x17d   : > { %v544_v38 = vcombine.low %v1379_v20, %v1382_v26  ;;  %v545_v41 = vcombine.high %v1379_v20, %v1382_v26 }
 0x17e   : > { %v499_v30 = vpop.f32.mrf.mxu1  ;;  %v1362_v31 = vpop.f32.mrf.mxu0 }
 0x17f   : > { %v528_v32 = vcombine.low %v489_v21, %v499_v30  ;;  %v529_v39 = vcombine.high %v489_v21, %v499_v30  ;;  %v552_v48 = vrot.slane %v544_v38, %v2195_v37  ;;  %v559_v53 = vrot.slane %v545_v41, %v2195_v37 }
 0x180   : > { %v1385_v35 = vpop.f32.mrf.mxu1  ;;  %v370_v36 = vpop.f32.mrf.mxu0 }
 0x181   : > { %v536_v42 = vrot.slane %v528_v32, %v2195_v37  ;;  %v543_v49 = vrot.slane %v529_v39, %v2195_v37 }
 0x182   : > { %v509_v40 = vpop.f32.mrf.mxu1  ;;  %v1365_v47 = vpop.f32.mrf.mxu0 }
 0x183   : > { %v592_v54 = vcombine.low %v536_v42, %v552_v48  ;;  %v593_v55 = vcombine.high %v536_v42, %v552_v48  ;;  %v608_v62 = vcombine.low %v543_v49, %v559_v53  ;;  %v609_v63 = vcombine.high %v543_v49, %v559_v53 }
 0x184   : > { %v1388_v44 = vpop.f32.mrf.mxu1  ;;  %v380_v61 = vpop.f32.mrf.mxu0 }
 0x185   : > { %v576_v45 = vcombine.low %v1385_v35, %v1388_v44  ;;  %v577_v46 = vcombine.high %v1385_v35, %v1388_v44  ;;  %v600_v4 = vrot.slane %v592_v54, %v2201_v56  ;;  %v607_v5 = vrot.slane %v593_v55, %v2201_v56 }
 0x186   : > { %v519_v50 = vpop.f32.mrf.mxu1  ;;  %v1368_v9 = vpop.f32.mrf.mxu0  ;;  %v616_v11 = vrot.slane %v608_v62, %v2201_v56  ;;  %v623_v12 = vrot.slane %v609_v63, %v2201_v56 }
 0x187   : > { %v560_v51 = vcombine.low %v509_v40, %v519_v50  ;;  %v561_v52 = vcombine.high %v509_v40, %v519_v50  ;;  %v584_v57 = vrot.slane %v576_v45, %v2195_v37  ;;  %v591_v58 = vrot.slane %v577_v46, %v2195_v37 }
 0x188   : > { %v390_v26 = vpop.f32.mrf.mxu0 }
 0x189   : > { %v568_v59 = vrot.slane %v560_v51, %v2195_v37  ;;  %v575_v60 = vrot.slane %v561_v52, %v2195_v37 }
 0x18b   : > { %v624_v0 = vcombine.low %v568_v59, %v584_v57  ;;  %v625_v1 = vcombine.high %v568_v59, %v584_v57  ;;  %v640_v2 = vcombine.low %v575_v60, %v591_v58  ;;  %v641_v3 = vcombine.high %v575_v60, %v591_v58 }
 0x18d   : > { %v632_v6 = vrot.slane %v624_v0, %v2201_v56  ;;  %v639_v7 = vrot.slane %v625_v1, %v2201_v56  ;;  %v648_v8 = vrot.slane %v640_v2, %v2201_v56  ;;  %v655_v10 = vrot.slane %v641_v3, %v2201_v56 }
 0x18f   : > { %v656_v13 = vcombine.low %v600_v4, %v632_v6  ;;  %v657_v14 = vcombine.high %v600_v4, %v632_v6  ;;  %v658_v15 = vcombine.low %v607_v5, %v639_v7  ;;  %v659_v16 = vcombine.high %v607_v5, %v639_v7 }
 0x190   : > { %v661_v17 = vcombine.high %v616_v11, %v648_v8  ;;  %v660_v18 = vcombine.low %v616_v11, %v648_v8  ;;  %v663_v19 = vcombine.high %v623_v12, %v655_v10  ;;  %v662_v20 = vcombine.low %v623_v12, %v655_v10 }
 0x191   : > { %v664_v21 = vadd.f32 %v656_v13, %v360_v27  ;;  %v665_v22 = vadd.f32 %v1359_v25, %v657_v14  ;;  %v666_v23 = vadd.f32 %v658_v15, %v370_v36  ;;  %v667_v24 = vadd.f32 %v1362_v31, %v659_v16 }
 0x192   : > { %v669_v28 = vadd.f32 %v1365_v47, %v661_v17  ;;  %v668_v29 = vadd.f32 %v660_v18, %v380_v61  ;;  %v671_v30 = vadd.f32 %v1368_v9, %v663_v19  ;;  %v670_v32 = vadd.f32 %v662_v20, %v390_v26 }
 0x193   : > { %v672_v33 = vcombine.low %v664_v21, %v666_v23  ;;  %v673_v34 = vcombine.high %v664_v21, %v666_v23  ;;  %v688_v35 = vcombine.low %v665_v22, %v667_v24  ;;  %v689_v38 = vcombine.high %v665_v22, %v667_v24 }
 0x194   : > { %v720_v39 = vcombine.low %v669_v28, %v671_v30  ;;  %v721_v40 = vcombine.high %v669_v28, %v671_v30  ;;  %v704_v41 = vcombine.low %v668_v29, %v670_v32  ;;  %v705_v27 = vcombine.high %v668_v29, %v670_v32 }
 0x195   : > { %v687_v25 = vrot.slane %v673_v34, %v2195_v37  ;;  %v703_v31 = vrot.slane %v689_v38, %v2195_v37  ;;  %v680_v36 = vrot.slane %v672_v33, %v2195_v37  ;;  %v696_v42 = vrot.slane %v688_v35, %v2195_v37 }
 0x196   : > { %v728_v43 = vrot.slane %v720_v39, %v2195_v37  ;;  %v735_v44 = vrot.slane %v721_v40, %v2195_v37  ;;  %v712_v45 = vrot.slane %v704_v41, %v2195_v37  ;;  %v719_v46 = vrot.slane %v705_v27, %v2195_v37 }
 0x197   : > { %v752_v47 = vcombine.low %v687_v25, %v703_v31  ;;  %v736_v48 = vcombine.low %v680_v36, %v696_v42  ;;  %v753_v49 = vcombine.high %v687_v25, %v703_v31  ;;  %v737_v50 = vcombine.high %v680_v36, %v696_v42 }
 0x198   : > { %v768_v51 = vcombine.low %v712_v45, %v728_v43  ;;  %v769_v52 = vcombine.high %v712_v45, %v728_v43  ;;  %v784_v53 = vcombine.low %v719_v46, %v735_v44  ;;  %v785_v54 = vcombine.high %v719_v46, %v735_v44 }
 0x199   : > { %v2230_v55 = vrot.slane %v752_v47, %v2201_v56  ;;  %v2233_v57 = vrot.slane %v736_v48, %v2201_v56  ;;  %v2236_v58 = vrot.slane %v753_v49, %v2201_v56  ;;  %v2239_v59 = vrot.slane %v737_v50, %v2201_v56 }
 0x19a   : > { %v2248_v60 = vrot.slane %v768_v51, %v2201_v56  ;;  %v2251_v61 = vrot.slane %v769_v52, %v2201_v56  ;;  %v2254_v62 = vrot.slane %v784_v53, %v2201_v56  ;;  %v2257_v63 = vrot.slane %v785_v54, %v2201_v56 }
 0x19b   : > { %v1288_v0 = vcombine.low %v2233_v57, %v2239_v59  ;;  %v1290_v1 = vcombine.high %v2233_v57, %v2239_v59  ;;  %v1292_v2 = vcombine.low %v2230_v55, %v2236_v58  ;;  %v1294_v3 = vcombine.high %v2230_v55, %v2236_v58 }
 0x19c   : > { %v805_v4 = vcombine.high %v2230_v55, %v2254_v62  ;;  %v801_v5 = vcombine.high %v2233_v57, %v2248_v60  ;;  %v807_v6 = vcombine.high %v2236_v58, %v2257_v63  ;;  %v803_v7 = vcombine.high %v2239_v59, %v2251_v61 }
 0x19d   : > { %v844_v8 = vrot.slane %v1288_v0, %v2195_v37  ;;  %v860_v9 = vrot.slane %v1290_v1, %v2195_v37  ;;  %v876_v10 = vrot.slane %v1292_v2, %v2195_v37  ;;  %v892_v11 = vrot.slane %v1294_v3, %v2195_v37 }
 0x19e   : > { %817 = vrot.lane.b32.xlu1 %v805_v4, %s1836_s19  ;;  %809 = vrot.lane.b32.xlu0 %v801_v5, %s1836_s19  ;;  %v1289_v12 = vcombine.low %v2248_v60, %v2251_v61  ;;  %v1291_v13 = vcombine.high %v2248_v60, %v2251_v61  ;;  %v1293_v14 = vcombine.low %v2254_v62, %v2257_v63 }
 0x19f   : > { %v901_v15 = vcombine.high %v844_v8, %v860_v9  ;;  %v933_v16 = vcombine.high %v876_v10, %v892_v11  ;;  %v900_v17 = vcombine.low %v844_v8, %v860_v9  ;;  %v932_v18 = vcombine.low %v876_v10, %v892_v11 }
 0x1a0   : > { %v851_v19 = vrot.slane %v1289_v12, %v2195_v37  ;;  %v867_v20 = vrot.slane %v1291_v13, %v2195_v37  ;;  %v883_v21 = vrot.slane %v1293_v14, %v2195_v37  ;;  %v1295_v22 = vcombine.high %v2254_v62, %v2257_v63 }
 0x1a1   : > { %v2293_v23 = vrot.slane %v901_v15, %v2201_v56  ;;  %v2296_v24 = vrot.slane %v933_v16, %v2201_v56  ;;  %v2299_v26 = vrot.slane %v900_v17, %v2201_v56  ;;  %v2302_v28 = vrot.slane %v932_v18, %v2201_v56 }
 0x1a2   : > { %821 = vrot.lane.b32.xlu1 %v807_v6, %s1836_s19  ;;  %813 = vrot.lane.b32.xlu0 %v803_v7, %s1836_s19  ;;  %v899_v29 = vrot.slane %v1295_v22, %v2195_v37  ;;  %v917_v30 = vcombine.high %v851_v19, %v867_v20  ;;  %v916_v32 = vcombine.low %v851_v19, %v867_v20 }
 0x1a3   : > { %v967_v33 = vcombine.high %v2293_v23, %v2296_v24  ;;  %v965_v34 = vcombine.high %v2299_v26, %v2302_v28  ;;  %v804_v35 = vcombine.low %v2230_v55, %v2254_v62  ;;  %v800_v38 = vcombine.low %v2233_v57, %v2248_v60 }
 0x1a4   : > { %v2316_v39 = vrot.slane %v917_v30, %v2201_v56  ;;  %v949_v40 = vcombine.high %v883_v21, %v899_v29  ;;  %v2319_v37 = vrot.slane %v916_v32, %v2201_v56  ;;  %v948_v41 = vcombine.low %v883_v21, %v899_v29 }
 0x1a5   : > { %v806_v27 = vcombine.low %v2236_v58, %v2257_v63  ;;  %v802_v25 = vcombine.low %v2239_v59, %v2251_v61  ;;  %v966_v31 = vcombine.low %v2293_v23, %v2296_v24  ;;  %v964_v36 = vcombine.low %v2299_v26, %v2302_v28 }
 0x1a6   : > { %977 = vrot.lane.b32.xlu1 %v967_v33, %s1836_s19  ;;  %973 = vrot.lane.b32.xlu0 %v965_v34, %s1836_s19  ;;  %v2333_v42 = vrot.slane %v949_v40, %v2201_v56  ;;  %v2336_v43 = vrot.slane %v948_v41, %v2201_v56 }
 0x1a8   : > { %v971_v44 = vcombine.high %v2316_v39, %v2333_v42  ;;  %v969_v45 = vcombine.high %v2319_v37, %v2336_v43  ;;  %v970_v46 = vcombine.low %v2316_v39, %v2333_v42  ;;  %v968_v47 = vcombine.low %v2319_v37, %v2336_v43 }
 0x1aa   : > { %985 = vrot.lane.b32.xlu1 %v971_v44, %s1836_s19  ;;  %981 = vrot.lane.b32.xlu0 %v969_v45, %s1836_s19  ;;  %s1009_s19 = sadd.s32 %s1300_s20, %s1007_s0  ;;  %s1664_s0 = scalar_lea.vmem %s1663_s13, 1024 }
 0x1ab   : > { %s1301_s25 = sshll.u32 %s1009_s19, 7  ;;  %p1666_p7 = scmp.lt.s32.totalorder %s1664_s0, %s1660_s14 }
 0x1ac   : > { %s1011_s21 = scalar_lea.hbm %s2560_s30, %s1301_s25 }
 0x1ad   : > { %p1667_p9 = por %p1666_p7, %p1665_p2 }
 0x1af   : > { %p1668_p11 = pnand %p1667_p9, %p1661_p0 }
 0x210   : > { %v818_v56 = vpop.permute.xlu1 %817  ;;  %v810_v48 = vpop.permute.xlu0 %809 }
 0x211   : > { %v827_v49 = vsel %vm824_vm1, %v804_v35, %v818_v56  ;;  %v825_v50 = vsel %vm824_vm1, %v800_v38, %v810_v48 }
 0x212   : > { %834 = vst [vmem:[%s831_s4 + $0x10] sm:$0xff] %v827_v49  ;;  %832 = vst [vmem:[%s831_s4] sm:$0xff] %v825_v50 }
 0x214   : > { %v822_v51 = vpop.permute.xlu1 %821  ;;  %v814_v52 = vpop.permute.xlu0 %813 }
 0x215   : > { %v828_v53 = vsel %vm824_vm1, %v806_v27, %v822_v51  ;;  %v826_v54 = vsel %vm824_vm1, %v802_v25, %v814_v52 }
 0x216   : > { %835 = vst [vmem:[%s831_s4 + $0x18] sm:$0xff] %v828_v53  ;;  %833 = vst [vmem:[%s831_s4 + $0x8] sm:$0xff] %v826_v54 }
 0x217   : > { %1671 = shalt.err (!%p1668_p11)  }
 0x218   : > { %s1672_s18 = scalar_lea.hbm %s1011_s21, 512  ;;  %s1674_s20 = scalar_lea.hbm %s2561_s24, 16384 }
 0x219   : > { %p1673_p12 = scmp.ne.s32.totalorder %s1011_s21, %s1672_s18  ;;  %p1675_p5 = scmp.lt.s32.totalorder %s1011_s21, %s2561_s24 }
 0x21a   : > { %p1676_p10 = scmp.lt.s32.totalorder %s1674_s20, %s1672_s18 }
 0x21c   : > { %p1677_p13 = por %p1676_p10, %p1675_p5 }
 0x21e   : > { %p1678_p1 = pnand %p1677_p13, %p1673_p12 }
 0x220   : > { %1681 = shalt.err (!%p1678_p1)  }
 0x221   : > { %1024 = dma.vmem_to_hbm [thread:$0]  %s1022_s17, 512, %s1011_s21, %s2372_s7  ;;  %v978_v55 = vpop.permute.xlu1 %977  ;;  %v974_v57 = vpop.permute.xlu0 %973 }
 0x222   : > { %s993_s15 = scalar_lea.vmem [#allocation3], %s1323_s10  ;;  %v989_v58 = vsel %vm824_vm1, %v966_v31, %v978_v55  ;;  %v988_v59 = vsel %vm824_vm1, %v964_v36, %v974_v57  ;;  %s1307_s22 = sshll.u32 %s2370_s5, 7 }
 0x223   : > { %s1051_s23 = sshll.u32 %s993_s15, 4  ;;  %995 = vst [vmem:[%s993_s15 + $0x8] sm:$0xff] %v989_v58  ;;  %994 = vst [vmem:[%s993_s15] sm:$0xff] %v988_v59  ;;  %s2401_s17 = scalar_lea.hbm %s2561_s24, %s1307_s22  ;;  %s2396_s23 = int_to_ptr.vmem [resolvable:$true] %s1051_s23 }
 0x224   : > { %s2404_s30 = scalar_lea.sflag %s2372_s7, 1 [#allocation4]  ;;  %s1682_s21 = scalar_lea.vmem %s2396_s23, 512 }
 0x225   : > { %v986_v60 = vpop.permute.xlu1 %985  ;;  %v982_v61 = vpop.permute.xlu0 %981  ;;  %p1683_p3 = scmp.ne.s32.totalorder %s2396_s23, %s1682_s21  ;;  %s1838_s5 = smov [#allocation3]  }
 0x226   : > { %v991_v62 = vsel %vm824_vm1, %v970_v46, %v986_v60  ;;  %v990_v63 = vsel %vm824_vm1, %v968_v47, %v982_v61  ;;  %s1686_s14 = sshll.u32 %s1838_s5, 4  ;;  %s1687_s14 = int_to_ptr.vmem [resolvable:$false] %s1686_s14 }
 0x227   : > { %997 = vst [vmem:[%s993_s15 + $0x18] sm:$0xff] %v991_v62  ;;  %996 = vst [vmem:[%s993_s15 + $0x10] sm:$0xff] %v990_v63  ;;  %p1684_p4 = pnand %p1683_p3, %p2243_p6  ;;  %s1688_s3 = scalar_lea.vmem %s1687_s14, 1024 }
 0x228   : > { %p1689_p2 = scmp.lt.s32.totalorder %s2396_s23, %s1687_s14  ;;  %p1690_p7 = scmp.lt.s32.totalorder %s1688_s3, %s1682_s21 }
 0x229   : > { %p1685_p0 = pneg %p1684_p4 }
 0x22a   : > { %p1691_p9 = por %p1690_p7, %p1689_p2 }
 0x22c   : > { %p1692_p11 = pnand %p1691_p9, %p1685_p0 }
 0x22e   : > { %1695 = shalt.err (!%p1692_p11)  }
 0x22f   : > { %s1696_s13 = scalar_lea.hbm %s2401_s17, 512  ;;  %p1701_p13 = scmp.lt.s32.totalorder %s2401_s17, %s2561_s24 }
 0x230   : > { %p1697_p12 = scmp.ne.s32.totalorder %s2401_s17, %s1696_s13  ;;  %p1702_p1 = scmp.lt.s32.totalorder %s1674_s20, %s1696_s13 }
 0x232   : > { %p1698_p5 = pnand %p1697_p12, %p2243_p6  ;;  %p1703_p3 = por %p1702_p1, %p1701_p13 }
 0x234   : > { %p1699_p10 = pneg %p1698_p5 }
 0x236   : > { %p1704_p4 = pnand %p1703_p3, %p1699_p10 }
 0x238   : > { %1707 = shalt.err (!%p1704_p4)  }
 0x239   : > { %1410 = dma.vmem_to_hbm [thread:$0]  (%p2243_p6), %s2396_s23, 512, %s2401_s17, %s2404_s30 }
 0x23a   : > { %s1066_s6 = scalar_lea.sflag [#allocation4], %s2193_s29 }
 0x23b   : > { %1767 = dma.done.wait (%p1457_p8), %s1066_s6, 512 }
 0x23c   : > { %1769 = vsyncadd (%p1457_p8), %s1066_s6, 4294966784  ;;  %s1436_s20 = scalar_select %p1457_p8, [#allocation6], [#allocation29] }
 0x23d   : > { %s2562_s11 = sadd.s32 4294967295, %s2557_s12  ;;  %s1199_s4 = scalar_lea.sflag %s1066_s6, 1 [#allocation4] }
 0x23e   : > { %s2600_s11 = smov (!%p1457_p8, %s2562_s11), 0 }
 0x23f   : > { %s1438_s27 = scalar_select %p1457_p8, [#allocation7], [#allocation30] }
 0x240   : > { %s1071_s25 = sld [smem:[%s1436_s20 + %s2600_s11]] }
 0x241   : > { %s1072_s29 = sld [smem:[%s1438_s27 + %s2600_s11]] }
 0x247   : > { %p1458_p6 = scmp.ne.s32.totalorder %s1071_s25, %s1072_s29 }
 0x249   : > { %p1440_p0 = pnand %p1458_p6, %p1457_p8 }
 0x24b   : > { %p1441_p2 = pneg %p1440_p0 }
 0x24d   : > { %1771 = dma.done.wait (%p1441_p2), %s1199_s4, 512 }
 0x24e   : > { %1773 = vsyncadd (%p1441_p2), %s1199_s4, 4294966784  ;;  %p1459_p7 = scmp.eq.s32.totalorder %s2557_s12, 9 }
 0x250   : > { %1775 = dma.done.wait (%p1459_p7), %s2372_s7, 512 }
 0x251   : > { %1777 = vsyncadd (%p1459_p7), %s2372_s7, 4294966784  ;;  %s1445_s15 = scalar_select %p1459_p7, [#allocation6], [#allocation31] }
 0x252   : > { %s2602_s12 = smov (!%p1459_p7, %s2557_s12), 0 }
 0x253   : > { %s1447_s23 = scalar_select %p1459_p7, [#allocation7], [#allocation32] }
 0x254   : > { %s1097_s22 = sld [smem:[%s1445_s15 + %s2602_s12]] }
 0x255   : > { %s1098_s2 = sld [smem:[%s1447_s23 + %s2602_s12]] }
 0x25b   : > { %p1460_p9 = scmp.ne.s32.totalorder %s1097_s22, %s1098_s2 }
 0x25d   : > { %p1449_p11 = pnand %p1460_p9, %p1459_p7 }
 0x25f   : > { %p1450_p12 = pneg %p1449_p11 }
 0x261   : > { %1779 = dma.done.wait (%p1450_p12), %s2404_s30, 512 }
 0x262   : > { %1781 = vsyncadd (%p1450_p12), %s2404_s30, 4294966784 }
 0x263 PF: > { %s29_s9 = sadd.s32 1, %s1824_s9   ;;  %s2563_s7 = sld [smem:[#allocation49_spill]] }
 0x264   : > { %p26_p8 = scmp.ge.s32.totalorder %s29_s9, 21   ;;  %s2564_s10 = sld [smem:[#allocation41_spill]] }
 0x265   : > { %s2565_s29 = sld [smem:[#allocation48_spill]]  ;;  %s2569_s0 = smov %s1788_s1 }
 0x266   : > { %s2566_s30 = sld [smem:[#allocation44_spill]]  ;;  %s2570_s1 = smov %s1792_s26 }
 0x267   : > { %s2567_s17 = sld [smem:[#allocation46_spill]]  ;;  %s2572_s27 = smov %s1800_s28 }
 0x268   : > { %s2568_s12 = sld [smem:[#allocation47_spill]]  ;;  %s2574_s6 = smov %s1820_s8 }
 0x269   : > { %s2571_s26 = smov %s2563_s7 }
 0x26a   : > { %s2573_s28 = smov %s2564_s10  ;;  %28 = sbr.rel (!%p26_p8) target bundleno = 27 (0x1b), region = 113 }
 0x26d   : > { %s2575_s7 = smov %s2567_s17 }
 0x26e   : > { %s2576_s8 = smov %s2568_s12 }
 0x26f   :  { %1111 = vsyncpa [#allocation9], 1 }
 0x270   :  { %1113 = vsyncpa [#allocation9 + $0x1], 1 }
 0x271   :  { %1114 = vsyncpa [#allocation11], 1 }
 0x272   :  { %1116 = vsyncpa [#allocation11 + $0x1], 1 }
 0x273   :  { %1117 = vsyncmov [#allocation4] }
 0x276   :  { %s1118_s21 = vpop.sfrf %1117 }
 0x277   :  { %p1317_p5 = scmp.ne.s32.totalorder %s1118_s21, 0 }
 0x279   :  { %1122 = shalt.err (%p1317_p5)  }
 0x27a   :  { %1124 = vsyncmov [#allocation4 + $0x1] }
 0x27d   :  { %s1125_s5 = vpop.sfrf %1124 }
 0x27e   :  { %p1318_p10 = scmp.ne.s32.totalorder %s1125_s5, 0 }
 0x280   :  { %1129 = shalt.err (%p1318_p10)  }
 0x281   :  { %1131 = vsyncmov [#allocation4 + $0x2] }
 0x284   :  { %s1132_s14 = vpop.sfrf %1131 }
 0x285   :  { %p1319_p13 = scmp.ne.s32.totalorder %s1132_s14, 0 }
 0x287   :  { %1136 = shalt.err (%p1319_p13)  }
 0x288   :  { %1138 = vsyncmov [#allocation4 + $0x3] }
 0x28b   :  { %s1139_s3 = vpop.sfrf %1138 }
 0x28c   :  { %p1320_p1 = scmp.ne.s32.totalorder %s1139_s3, 0 }
 0x28e   :  { %1143 = shalt.err (%p1320_p1)  }

</bundles_post_ra>
